<compile_context>
chip_gen: v6e
topology: v6e:2x2x1
jax: 0.10.0
libtpu: 0.0.40
codegen_flags: <defaults>
</compile_context>

<pallas_src>
import functools

import jax
import jax.numpy as jnp
from jax import lax
from jax.experimental import pallas as pl
from jax.experimental.pallas import tpu as pltpu


def _fcn_head_kernel(x_ref, w3_ref, bias_ref, cls_w_ref, cls_b_ref, mask_ref,
                     o_ref, *, H, W, Cout):
    # x_ref:    (1, H*W, Cin)      flattened NHWC image (native dtype, fed to MXU as-is)
    # w3_ref:   (3, Cin, 3*Cout)   conv rows dy=0..2; dx taps concatenated along N, BN scale folded
    # bias_ref: (1, Cout)          folded eval-mode BatchNorm bias
    # cls_w_ref:(Cout, NLp) f32, cls_b_ref: (1, NLp) f32   (NLp = NL padded to 128)
    # mask_ref: (H*W, 4) f32       [row>0, row<H-1, col>0, col<W-1] boundary masks
    # o_ref:    (1, H*W, NLp)
    HW = H * W
    x = x_ref[0]                       # (HW, Cin), loaded once, never sliced
    m = mask_ref[...]                  # (HW, 4)

    # One MXU matmul per kernel row; f32 accumulation via preferred_element_type.
    r0 = jnp.dot(x, w3_ref[0], preferred_element_type=jnp.float32)   # dy = 0 taps
    r1 = jnp.dot(x, w3_ref[1], preferred_element_type=jnp.float32)   # dy = 1 taps
    r2 = jnp.dot(x, w3_ref[2], preferred_element_type=jnp.float32)   # dy = 2 taps

    # Vertical (dy) shifts: output row r takes the dy=0 taps from input row r-1 (roll +W,
    # masked on row 0) and the dy=2 taps from input row r+1 (roll -W, masked on row H-1).
    # The circular wrap of each roll lands exactly in the masked rows.
    acc3 = (pltpu.roll(r0, W, axis=0) * m[:, 0:1]
            + r1
            + pltpu.roll(r2, HW - W, axis=0) * m[:, 1:2])            # (HW, 3*Cout)

    # Horizontal (dx) shifts: +-1 sublane rolls of the Cout-wide column blocks; the wrap of
    # each roll lands exactly in the masked columns (col 0 / col W-1).
    left  = pltpu.roll(acc3[:, :Cout], 1, axis=0) * m[:, 2:3]
    mid   = acc3[:, Cout:2 * Cout]
    right = pltpu.roll(acc3[:, 2 * Cout:], HW - 1, axis=0) * m[:, 3:4]

    # Folded BatchNorm bias + ReLU (scale already folded into w3 in the wrapper).
    y = jnp.maximum(left + mid + right + bias_ref[...], 0.0)         # (HW, Cout) f32

    # 1x1 classifier conv == per-pixel channel matmul, fused bias, lane-dense (NLp) store.
    logits = jnp.dot(y, cls_w_ref[...], preferred_element_type=jnp.float32)
    o_ref[0] = (logits + cls_b_ref[...]).astype(o_ref.dtype)


def _vmem_limit_bytes(HW, Cin, Cout, NLp, in_itemsize, out_itemsize):
    in_block = HW * Cin * in_itemsize
    out_block = HW * NLp * out_itemsize
    consts = (3 * Cin * 3 * Cout * in_itemsize + Cout * 4
              + Cout * NLp * 4 + NLp * 4 + HW * 4 * 4)
    temps = 8 * HW * 3 * Cout * 4 + 2 * HW * NLp * 4   # f32 intermediates (r0..r2, acc3, rolls)
    est = 2 * in_block + 2 * out_block + consts + temps + (4 << 20)
    # Floor gives compile headroom for tiny shapes; cap only matters for shapes that would not
    # fit v7x's 64 MiB physical VMEM anyway (they run on v5e/v6e's 128 MiB).
    return int(min(max(est, 32 << 20), 96 << 20))


def beit_fcn_head(encoder_hidden_states, params, *, in_index=2, bn_eps=1e-5,
                  compute_dtype=None, spatial_shape=None):
    """Fused Pallas BeitFCNHead forward.

    encoder_hidden_states: sequence of feature maps; each either (B, Cin, H, W) (PyTorch NCHW)
        or (B, H*W, Cin) (transformer layout; pass spatial_shape=(H, W) to skip the transpose).
    params: dict with
      conv_w   (Cout, Cin, 3, 3)   Conv2d weight (no bias)
      bn_gamma, bn_beta, bn_mean, bn_var  (Cout,)   BatchNorm2d params / running stats
      cls_w    (NL, Cout, 1, 1)    classifier Conv2d weight
      cls_b    (NL,)               classifier Conv2d bias
    compute_dtype: optional dtype for MXU operands (e.g. jnp.bfloat16); default = input dtype.
    Returns (B, NL, H, W) logits in the input dtype.
    """
    x = encoder_hidden_states[in_index]
    out_dtype = x.dtype
    if x.ndim == 4:                                   # (B, Cin, H, W) NCHW
        B, Cin, H, W = x.shape
        x_flat = jnp.transpose(x, (0, 2, 3, 1)).reshape(B, H * W, Cin)
    else:                                             # (B, H*W, Cin) transformer layout
        B, HW_, Cin = x.shape
        H, W = spatial_shape
        assert HW_ == H * W
        x_flat = x
    HW = H * W

    cdt = jnp.dtype(compute_dtype) if compute_dtype is not None else x_flat.dtype
    x_flat = x_flat.astype(cdt)

    conv_w = params["conv_w"]
    Cout = conv_w.shape[0]
    cls_w = params["cls_w"]
    NL = cls_w.shape[0]
    NLp = -(-NL // 128) * 128                         # lane-dense classifier output

    # Fold eval-mode BatchNorm: scale into the conv weights, keep only the bias.
    scale = params["bn_gamma"] / jnp.sqrt(params["bn_var"] + bn_eps)          # (Cout,)
    bias = (params["bn_beta"] - params["bn_mean"] * scale).reshape(1, Cout).astype(jnp.float32)
    w = conv_w.astype(jnp.float32) * scale[:, None, None, None]               # (Cout, Cin, 3, 3)
    # (Cout, Cin, kh, kw) -> (kh=dy, Cin, kw=dx, Cout) -> (3, Cin, 3*Cout), dx-major columns.
    w3 = jnp.transpose(w, (2, 1, 3, 0)).reshape(3, Cin, 3 * Cout).astype(cdt)

    # Classifier weights/bias zero-padded to NLp labels (lane-dense store), kept in f32.
    cls_w2 = jnp.zeros((Cout, NLp), jnp.float32).at[:, :NL].set(
        jnp.transpose(cls_w.reshape(NL, Cout), (1, 0)).astype(jnp.float32))
    cls_b2 = jnp.zeros((1, NLp), jnp.float32).at[0, :NL].set(
        params["cls_b"].astype(jnp.float32))

    # Grid-invariant boundary masks, hoisted out of the kernel body.
    idx = jnp.arange(HW)
    col = idx % W
    masks = jnp.stack([idx >= W,            # row > 0      (dy = 0 tap valid)
                       idx < HW - W,        # row < H - 1  (dy = 2 tap valid)
                       col > 0,             # col > 0      (dx = 0 tap valid)
                       col < W - 1],        # col < W - 1  (dx = 2 tap valid)
                      axis=1).astype(jnp.float32)                            # (HW, 4)

    kernel = functools.partial(_fcn_head_kernel, H=H, W=W, Cout=Cout)
    vmem_limit = _vmem_limit_bytes(HW, Cin, Cout, NLp, cdt.itemsize,
                                   jnp.dtype(out_dtype).itemsize)

    out = pl.pallas_call(
        kernel,
        out_shape=jax.ShapeDtypeStruct((B, HW, NLp), out_dtype),
        grid_spec=pltpu.PrefetchScalarGridSpec(
            num_scalar_prefetch=0,
            grid=(B,),
            in_specs=[
                pl.BlockSpec((1, HW, Cin), lambda b: (b, 0, 0)),
                pl.BlockSpec((3, Cin, 3 * Cout), lambda b: (0, 0, 0)),
                pl.BlockSpec((1, Cout), lambda b: (0, 0)),
                pl.BlockSpec((Cout, NLp), lambda b: (0, 0)),
                pl.BlockSpec((1, NLp), lambda b: (0, 0)),
                pl.BlockSpec((HW, 4), lambda b: (0, 0)),
            ],
            out_specs=pl.BlockSpec((1, HW, NLp), lambda b: (b, 0, 0)),
        ),
        compiler_params=pltpu.CompilerParams(
            dimension_semantics=("parallel",),
            vmem_limit_bytes=vmem_limit,
        ),
    )(x_flat, w3, bias, cls_w2, cls_b2, masks)

    # Slice away the NL padding and return PyTorch NCHW logits.
    out = out[:, :, :NL].reshape(B, H, W, NL)
    return jnp.transpose(out, (0, 3, 1, 2))


def beit_fcn_head_ref(encoder_hidden_states, params, *, in_index=2, bn_eps=1e-5):
    """Pure-JAX reference matching the PyTorch forward (eval-mode BatchNorm)."""
    x = encoder_hidden_states[in_index].astype(jnp.float32)
    conv_w = params["conv_w"].astype(jnp.float32)
    y = lax.conv_general_dilated(
        x, conv_w, window_strides=(1, 1), padding=((1, 1), (1, 1)),
        dimension_numbers=("NCHW", "OIHW", "NCHW"),
        precision=lax.Precision.HIGHEST)
    scale = params["bn_gamma"] / jnp.sqrt(params["bn_var"] + bn_eps)
    bias = params["bn_beta"] - params["bn_mean"] * scale
    y = y * scale[None, :, None, None] + bias[None, :, None, None]
    y = jnp.maximum(y, 0.0)
    nl = params["cls_w"].shape[0]
    cls_w = params["cls_w"].astype(jnp.float32).reshape(nl, -1)   # (NL, Cout)
    logits = jnp.einsum("bchw,nc->bnhw", y, cls_w,
                        precision=lax.Precision.HIGHEST)
    logits = logits + params["cls_b"][None, :, None, None]
    return logits.astype(encoder_hidden_states[in_index].dtype)


if __name__ == "__main__":
    key = jax.random.PRNGKey(0)
    # Small shapes consistent with the module: hidden_size=32, auxiliary_channels=16,
    # num_labels=4, 8x8 feature maps, batch=2, in_index=2 (4 encoder feature maps).
    B, Cin, Cout, NL, H, W = 2, 32, 16, 4, 8, 8
    in_index = 2
    keys = jax.random.split(key, 11)

    def q(v, s):  # quantize to multiples of 1/s (keeps matmul inputs exactly representable)
        return jnp.round(v * s) / s

    encoder_hidden_states = [
        q(jax.random.normal(keys[i], (B, Cin, H, W), jnp.float32), 8)
        for i in range(4)
    ]
    params = {
        "conv_w": q(0.1 * jax.random.normal(keys[4], (Cout, Cin, 3, 3), jnp.float32), 256),
        "bn_gamma": 1.0 + q(0.1 * jax.random.normal(keys[5], (Cout,), jnp.float32), 128),
        "bn_beta": q(0.1 * jax.random.normal(keys[6], (Cout,), jnp.float32), 128),
        "bn_mean": q(0.1 * jax.random.normal(keys[7], (Cout,), jnp.float32), 128),
        "bn_var": 0.5 + jax.random.uniform(keys[8], (Cout,), jnp.float32),
        "cls_w": q(0.2 * jax.random.normal(keys[9], (NL, Cout, 1, 1), jnp.float32), 256),
        "cls_b": q(0.1 * jax.random.normal(keys[10], (NL,), jnp.float32), 256),
    }

    out = beit_fcn_head(encoder_hidden_states, params, in_index=in_index)
    out = jax.block_until_ready(out)

    ref = beit_fcn_head_ref(encoder_hidden_states, params, in_index=in_index)
    assert out.shape == (B, NL, H, W), out.shape
    max_err = float(jnp.max(jnp.abs(out - ref)))
    assert jnp.allclose(out, ref, atol=5e-3, rtol=5e-3), max_err

    print("KERNEL_OK")
</pallas_src>

<mosaic_0001>
module attributes {stable_mosaic.version = 11 : i64} {
  func.func @_fcn_head_kernel(%arg0: i32, %arg1: memref<1x64x32xf32, #tpu.memory_space<vmem>>, %arg2: memref<3x32x48xf32, #tpu.memory_space<vmem>>, %arg3: memref<1x16xf32, #tpu.memory_space<vmem>>, %arg4: memref<16x128xf32, #tpu.memory_space<vmem>>, %arg5: memref<1x128xf32, #tpu.memory_space<vmem>>, %arg6: memref<64x4xf32, #tpu.memory_space<vmem>>, %arg7: memref<1x64x128xf32, #tpu.memory_space<vmem>>) attributes {dimension_semantics = [#tpu.dimension_semantics<parallel>], iteration_bounds = array<i64: 2>, scalar_prefetch = 0 : i64, scratch_operands = 0 : i64, tpu.core_type = #tpu.core_type<tc>, window_params = [{transform_indices = @transform_0, window_bounds = array<i64: 1, 64, 32>}, {pipeline_mode = #tpu.pipeline_mode<synchronous>, transform_indices = @transform_1, window_bounds = array<i64: 3, 32, 48>}, {pipeline_mode = #tpu.pipeline_mode<synchronous>, transform_indices = @transform_2, window_bounds = array<i64: 1, 16>}, {pipeline_mode = #tpu.pipeline_mode<synchronous>, transform_indices = @transform_3, window_bounds = array<i64: 16, 128>}, {pipeline_mode = #tpu.pipeline_mode<synchronous>, transform_indices = @transform_4, window_bounds = array<i64: 1, 128>}, {pipeline_mode = #tpu.pipeline_mode<synchronous>, transform_indices = @transform_5, window_bounds = array<i64: 64, 4>}, {transform_indices = @transform_6, window_bounds = array<i64: 1, 64, 128>}]} {
    %c0 = arith.constant 0 : index
    %c0_0 = arith.constant 0 : index
    %c0_1 = arith.constant 0 : index
    %0 = vector.load %arg1[%c0, %c0_0, %c0_1] : memref<1x64x32xf32, #tpu.memory_space<vmem>>, vector<1x64x32xf32>
    %1 = vector.shape_cast %0 : vector<1x64x32xf32> to vector<64x32xf32>
    %c0_2 = arith.constant 0 : index
    %c0_3 = arith.constant 0 : index
    %2 = vector.load %arg6[%c0_2, %c0_3] : memref<64x4xf32, #tpu.memory_space<vmem>>, vector<64x4xf32>
    %c0_4 = arith.constant 0 : index
    %c0_5 = arith.constant 0 : index
    %c0_6 = arith.constant 0 : index
    %3 = vector.load %arg2[%c0_4, %c0_5, %c0_6] : memref<3x32x48xf32, #tpu.memory_space<vmem>>, vector<1x32x48xf32>
    %4 = vector.shape_cast %3 : vector<1x32x48xf32> to vector<32x48xf32>
    %cst = arith.constant dense<0.000000e+00> : vector<64x48xf32>
    %5 = tpu.matmul %1, %4, %cst {dimension_numbers = #tpu.dot_dimension_numbers<[1], [0], [0], [1], [0, 0, 1, 1], [], []>} : vector<64x32xf32>, vector<32x48xf32>, vector<64x48xf32> -> vector<64x48xf32>
    %c1 = arith.constant 1 : index
    %c0_7 = arith.constant 0 : index
    %c0_8 = arith.constant 0 : index
    %6 = vector.load %arg2[%c1, %c0_7, %c0_8] : memref<3x32x48xf32, #tpu.memory_space<vmem>>, vector<1x32x48xf32>
    %7 = vector.shape_cast %6 : vector<1x32x48xf32> to vector<32x48xf32>
    %cst_9 = arith.constant dense<0.000000e+00> : vector<64x48xf32>
    %8 = tpu.matmul %1, %7, %cst_9 {dimension_numbers = #tpu.dot_dimension_numbers<[1], [0], [0], [1], [0, 0, 1, 1], [], []>} : vector<64x32xf32>, vector<32x48xf32>, vector<64x48xf32> -> vector<64x48xf32>
    %c2 = arith.constant 2 : index
    %c0_10 = arith.constant 0 : index
    %c0_11 = arith.constant 0 : index
    %9 = vector.load %arg2[%c2, %c0_10, %c0_11] : memref<3x32x48xf32, #tpu.memory_space<vmem>>, vector<1x32x48xf32>
    %10 = vector.shape_cast %9 : vector<1x32x48xf32> to vector<32x48xf32>
    %cst_12 = arith.constant dense<0.000000e+00> : vector<64x48xf32>
    %11 = tpu.matmul %1, %10, %cst_12 {dimension_numbers = #tpu.dot_dimension_numbers<[1], [0], [0], [1], [0, 0, 1, 1], [], []>} : vector<64x32xf32>, vector<32x48xf32>, vector<64x48xf32> -> vector<64x48xf32>
    %c8_i32 = arith.constant 8 : i32
    %12 = tpu.dynamic_rotate %5 by %c8_i32 dim 0 : vector<64x48xf32>, i32 -> vector<64x48xf32>
    %13 = vector.extract_strided_slice %2 {offsets = [0, 0], sizes = [64, 1], strides = [1, 1]} : vector<64x4xf32> to vector<64x1xf32>
    %14 = vector.broadcast %13 : vector<64x1xf32> to vector<64x48xf32>
    %15 = arith.mulf %12, %14 : vector<64x48xf32>
    %16 = arith.addf %15, %8 : vector<64x48xf32>
    %c56_i32 = arith.constant 56 : i32
    %17 = tpu.dynamic_rotate %11 by %c56_i32 dim 0 : vector<64x48xf32>, i32 -> vector<64x48xf32>
    %18 = vector.extract_strided_slice %2 {offsets = [0, 1], sizes = [64, 1], strides = [1, 1]} : vector<64x4xf32> to vector<64x1xf32>
    %19 = vector.broadcast %18 : vector<64x1xf32> to vector<64x48xf32>
    %20 = arith.mulf %17, %19 : vector<64x48xf32>
    %21 = arith.addf %16, %20 : vector<64x48xf32>
    %22 = vector.extract_strided_slice %21 {offsets = [0, 0], sizes = [64, 16], strides = [1, 1]} : vector<64x48xf32> to vector<64x16xf32>
    %c1_i32 = arith.constant 1 : i32
    %23 = tpu.dynamic_rotate %22 by %c1_i32 dim 0 : vector<64x16xf32>, i32 -> vector<64x16xf32>
    %24 = vector.extract_strided_slice %2 {offsets = [0, 2], sizes = [64, 1], strides = [1, 1]} : vector<64x4xf32> to vector<64x1xf32>
    %25 = vector.broadcast %24 : vector<64x1xf32> to vector<64x16xf32>
    %26 = arith.mulf %23, %25 : vector<64x16xf32>
    %27 = vector.extract_strided_slice %21 {offsets = [0, 16], sizes = [64, 16], strides = [1, 1]} : vector<64x48xf32> to vector<64x16xf32>
    %28 = vector.extract_strided_slice %21 {offsets = [0, 32], sizes = [64, 16], strides = [1, 1]} : vector<64x48xf32> to vector<64x16xf32>
    %c63_i32 = arith.constant 63 : i32
    %29 = tpu.dynamic_rotate %28 by %c63_i32 dim 0 : vector<64x16xf32>, i32 -> vector<64x16xf32>
    %30 = vector.extract_strided_slice %2 {offsets = [0, 3], sizes = [64, 1], strides = [1, 1]} : vector<64x4xf32> to vector<64x1xf32>
    %31 = vector.broadcast %30 : vector<64x1xf32> to vector<64x16xf32>
    %32 = arith.mulf %29, %31 : vector<64x16xf32>
    %33 = arith.addf %26, %27 : vector<64x16xf32>
    %34 = arith.addf %33, %32 : vector<64x16xf32>
    %c0_13 = arith.constant 0 : index
    %c0_14 = arith.constant 0 : index
    %35 = vector.load %arg3[%c0_13, %c0_14] : memref<1x16xf32, #tpu.memory_space<vmem>>, vector<1x16xf32>
    %36 = vector.broadcast %35 : vector<1x16xf32> to vector<64x16xf32>
    %37 = arith.addf %34, %36 : vector<64x16xf32>
    %cst_15 = arith.constant 0.000000e+00 : f32
    %38 = vector.broadcast %cst_15 : f32 to vector<64x16xf32>
    %39 = arith.maximumf %37, %38 : vector<64x16xf32>
    %c0_16 = arith.constant 0 : index
    %c0_17 = arith.constant 0 : index
    %40 = vector.load %arg4[%c0_16, %c0_17] : memref<16x128xf32, #tpu.memory_space<vmem>>, vector<16x128xf32>
    %cst_18 = arith.constant dense<0.000000e+00> : vector<64x128xf32>
    %41 = tpu.matmul %39, %40, %cst_18 {dimension_numbers = #tpu.dot_dimension_numbers<[1], [0], [0], [1], [0, 0, 1, 1], [], []>} : vector<64x16xf32>, vector<16x128xf32>, vector<64x128xf32> -> vector<64x128xf32>
    %c0_19 = arith.constant 0 : index
    %c0_20 = arith.constant 0 : index
    %42 = vector.load %arg5[%c0_19, %c0_20] : memref<1x128xf32, #tpu.memory_space<vmem>>, vector<1x128xf32>
    %43 = vector.broadcast %42 : vector<1x128xf32> to vector<64x128xf32>
    %44 = arith.addf %41, %43 : vector<64x128xf32>
    %c0_21 = arith.constant 0 : index
    %c0_22 = arith.constant 0 : index
    %c0_23 = arith.constant 0 : index
    %45 = vector.load %arg7[%c0_21, %c0_22, %c0_23] : memref<1x64x128xf32, #tpu.memory_space<vmem>>, vector<1x64x128xf32>
    %46 = vector.shape_cast %45 : vector<1x64x128xf32> to vector<64x128xf32>
    %47 = vector.shape_cast %44 : vector<64x128xf32> to vector<1x64x128xf32>
    tpu.vector_store %arg7[%c0_21, %c0_22, %c0_23], %47 {strides = array<i32>} : memref<1x64x128xf32, #tpu.memory_space<vmem>>, vector<1x64x128xf32>,
    return
  }
  func.func @transform_0(%arg0: i32) -> (i32, i32, i32) {
    %c0_i32 = arith.constant 0 : i32
    %c0_i32_0 = arith.constant 0 : i32
    %c0_i32_1 = arith.constant 0 : i32
    return %arg0, %c0_i32, %c0_i32_0 : i32, i32, i32
  }
  func.func @transform_1(%arg0: i32) -> (i32, i32, i32) {
    %c0_i32 = arith.constant 0 : i32
    %c0_i32_0 = arith.constant 0 : i32
    %c0_i32_1 = arith.constant 0 : i32
    %c0_i32_2 = arith.constant 0 : i32
    return %c0_i32, %c0_i32_0, %c0_i32_1 : i32, i32, i32
  }
  func.func @transform_2(%arg0: i32) -> (i32, i32) {
    %c0_i32 = arith.constant 0 : i32
    %c0_i32_0 = arith.constant 0 : i32
    %c0_i32_1 = arith.constant 0 : i32
    return %c0_i32, %c0_i32_0 : i32, i32
  }
  func.func @transform_3(%arg0: i32) -> (i32, i32) {
    %c0_i32 = arith.constant 0 : i32
    %c0_i32_0 = arith.constant 0 : i32
    %c0_i32_1 = arith.constant 0 : i32
    return %c0_i32, %c0_i32_0 : i32, i32
  }
  func.func @transform_4(%arg0: i32) -> (i32, i32) {
    %c0_i32 = arith.constant 0 : i32
    %c0_i32_0 = arith.constant 0 : i32
    %c0_i32_1 = arith.constant 0 : i32
    return %c0_i32, %c0_i32_0 : i32, i32
  }
  func.func @transform_5(%arg0: i32) -> (i32, i32) {
    %c0_i32 = arith.constant 0 : i32
    %c0_i32_0 = arith.constant 0 : i32
    %c0_i32_1 = arith.constant 0 : i32
    return %c0_i32, %c0_i32_0 : i32, i32
  }
  func.func @transform_6(%arg0: i32) -> (i32, i32, i32) {
    %c0_i32 = arith.constant 0 : i32
    %c0_i32_0 = arith.constant 0 : i32
    %c0_i32_1 = arith.constant 0 : i32
    return %arg0, %c0_i32, %c0_i32_0 : i32, i32, i32
  }
}

</mosaic_0001>

<bundles_post_ra>
// kernel: tpu_custom_call.1
= control target key start
LH: loop header
LB: loop body
LE: loop exit
PB: predicated region body
PF: predicated region fallthrough
CT: control target
= control target key end

     0   :  { %11 = vsyncpa [#allocation3], 0  ;;  %s1860_s0 = inlined_call_operand.vmem [shape: f32[2,64,32], index: 0, kind: input, shape index: {}]   ;;  %s1861_s1 = inlined_call_operand.vmem [shape: f32[3,32,48], index: 1, kind: input, shape index: {}]   ;;  %s1862_s2 = inlined_call_operand.vmem [shape: f32[1,16], index: 2, kind: input, shape index: {}]   ;;  %s1863_s3 = inlined_call_operand.vmem [shape: f32[16,128], index: 3, kind: input, shape index: {}]   ;;  %s1864_s4 = inlined_call_operand.vmem [shape: f32[1,128], index: 4, kind: input, shape index: {}]   ;;  %s1865_s5 = inlined_call_operand.vmem [shape: f32[64,4], index: 5, kind: input, shape index: {}]   ;;  %s1866_s6 = inlined_call_operand.hbm [shape: f32[2,64,128], index: 6, kind: output, shape index: {}]  }
   0x1   :  { %13 = vsyncpa [#allocation3 + $0x1], 0  ;;  %s1509_s21 = smov 0   ;;  %s1511_s22 = smov 0  }
   0x2   :  { %s1513_s23 = smov 0   ;;  %s1515_s24 = smov 0  }
   0x3 LB: > { %s1530_s25 = sadd.s32 4294967295, %s1463_s24   ;;  %s1158_s26 = sadd.s32 4294967294, %s1463_s24   ;;  %s1463_s24 = sphi %s1515_s24, %s1872_s24   ;;  %s1459_s23 = sphi %s1513_s23, %s1871_s23   ;;  %s1455_s22 = sphi %s1511_s22, %s1870_s22   ;;  %s1451_s21 = sphi %s1509_s21, %s1869_s21  }
   0x4   : > { %s1534_s27 = sadd.s32 1, %s1463_s24   ;;  %s157_s28 = sadd.s32 1, %s1459_s23 }
   0x5   : > { %s154_s29 = ssub.s32 %s1463_s24, %s1534_s27  ;;  %p167_p0 = scmp.ne.s32.totalorder %s1459_s23, %s1455_s22 }
   0x6   : > { %p155_p1 = scmp.eq.s32.totalorder %s154_s29, 0  ;;  %p168_p2 = scmp.eq.s32.totalorder %s1530_s25, 1 }
   0x7   : > { %p173_p3 = scmp.ne.s32.totalorder %s1455_s22, %s1451_s21  ;;  %p174_p4 = scmp.eq.s32.totalorder %s1158_s26, 1 }
   0x8   : > { %s1545_s30 = scalar_select %p155_p1, %s1459_s23, %s157_s28  }
   0x9   : > { %p1547_p5 = por %p168_p2, %p167_p0  ;;  %p1551_p6 = por %p174_p4, %p173_p3 }
   0xa   : > { %p1161_p7 = scmp.ge.s32.totalorder %s1463_s24, 1  ;;  %p215_p8 = scmp.lt.s32.totalorder %s1463_s24, 3 }
   0xc   : > { %p216_p9 = pnand %p1161_p7, %p215_p8 }
   0xd   : > { %p245_p10 = scmp.lt.s32.totalorder (!%p216_p9), %s1530_s25, 1  ;;  %s1469_s9 = smov (!%p216_p9), 96  }
   0xe   : > { %219 = sbr.rel (%p216_p9) target bundleno = 614 (0x266), region = 44  ;;  %s1470_s12 = smov (!%p216_p9), 112  }
   0xf   : > { %s242_s17 = sand.u32 (!%p216_p9), 1, %s1455_s22   ;;  %s1213_s28 = sshll.u32 (!%p216_p9), %s1530_s25, 10 }
  0x10   : > { %s1162_s18 = sshll.u32 (!%p216_p9), %s242_s17, 6  ;;  %s1471_s13 = smov (!%p216_p9), [#allocation2]  }
  0x13   : > { %v269_v0 = vld [vmem:[%s1861_s1 + $0x18] sm:$0xff]  ;;  %v268_v2 = vld [vmem:[%s1861_s1 + $0x10] sm:$0xff]  ;;  %v267_v4 = vld [vmem:[%s1861_s1 + $0x8] sm:$0xff]  ;;  %s246_s26 = scalar_select %p245_p10, %s1530_s25, 1  ;;  %vm270_vm0 = vcmask 261120   ;;  %v1465_v16 = vmov 0   ;;  %v732_v62 = vlaneseq }
  0x14   : > { %v1176_v1 = vld [vmem:[%s1861_s1 + $0x38] sm:$0xff]  ;;  %1260 = vmatprep.subr.mxu0 %v269_v0  ;;  %v1175_v3 = vld [vmem:[%s1861_s1 + $0x30] sm:$0xff]  ;;  %v1174_v5 = vld [vmem:[%s1861_s1 + $0x28] sm:$0xff]  ;;  %1383 = vset.pattern.permute.xlu1 %v1465_v16  ;;  %v1466_v23 = vmov 1   ;;  %v1467_v30 = vmov 2   ;;  %v1468_v31 = vmov 3  }
  0x15   : > { %1280 = vmatprep.subr.mxu1 %v1176_v1  ;;  %1261 = vmatpush3.msra.mxu0 %v269_v0  ;;  %v266_v6 = vld [vmem:[%s1861_s1] sm:$0xff]  ;;  %s1212_s11 = sshll.u32 %s246_s26, 6  ;;  %v1188_v10 = vld [vmem:[%s1861_s1 + $0x58] sm:$0xff]  ;;  %v1187_v12 = vld [vmem:[%s1861_s1 + $0x50] sm:$0xff]  ;;  %vm944_vm3 = vcmask 130048   ;;  %s244_s26 = scalar_lea.vmem [#allocation2], %s1162_s18 }
  0x16   : > { %1281 = vmatpush3.msra.mxu1 %v1176_v1  ;;  %1262 = vmatprep.subr.mxu0 %v268_v2  ;;  %v1173_v7 = vld [vmem:[%s1861_s1 + $0x20] sm:$0xff]  ;;  %s1586_s14 = scalar_lea.vmem %s1860_s0, %s1212_s11  ;;  %v1186_v15 = vld [vmem:[%s1861_s1 + $0x48] sm:$0xff]  ;;  %v1613_v17 = vld [vmem:[%s1865_s5 + $0x10] sm:$0xff]  ;;  %s1096_s29 = sshll.u32 %s244_s26, 4  ;;  %s1816_s29 = int_to_ptr.vmem [resolvable:$true] %s1096_s29 }
  0x17   : > { %1282 = vmatprep.subr.mxu1 %v1175_v3  ;;  %1263 = vmatpush3.msra.mxu0 %v268_v2  ;;  %v250_v8 = vld [vmem:[%s1586_s14] sm:$0xff]  ;;  %v251_v9 = vld [vmem:[%s1586_s14 + $0x8] sm:$0xff]  ;;  %v252_v11 = vld [vmem:[%s1586_s14 + $0x10] sm:$0xff]  ;;  %s1814_s11 = scalar_lea.hbm %s1866_s6, %s1213_s28  ;;  %s1403_s25 = scalar_lea.vmem %s1816_s29, 1024 }
  0x18   : > { %1283 = vmatpush3.msra.mxu1 %v1175_v3  ;;  %1264 = vmatprep.subr.mxu0 %v267_v4  ;;  %v253_v13 = vld [vmem:[%s1586_s14 + $0x18] sm:$0xff]  ;;  %v254_v14 = vld [vmem:[%s1586_s14 + $0x20] sm:$0xff]  ;;  %v255_v18 = vld [vmem:[%s1586_s14 + $0x28] sm:$0xff]  ;;  %p1404_p11 = scmp.ne.s32.totalorder %s1816_s29, %s1403_s25 }
  0x19   : > { %1284 = vmatprep.subr.mxu1 %v1174_v5  ;;  %1265 = vmatpush3.msra.mxu0 %v267_v4  ;;  %v256_v19 = vld [vmem:[%s1586_s14 + $0x30] sm:$0xff]  ;;  %v1185_v20 = vld [vmem:[%s1861_s1 + $0x40] sm:$0xff]  ;;  %v257_v21 = vld [vmem:[%s1586_s14 + $0x38] sm:$0xff]  ;;  %s1407_s14 = sshll.u32 %s1471_s13, 4  ;;  %s1408_s14 = int_to_ptr.vmem [resolvable:$false] %s1407_s14 }
  0x1a   : > { %1285 = vmatpush3.msra.mxu1 %v1174_v5  ;;  %1266 = vmatprep.subr.mxu0 %v266_v6  ;;  %v258_v22 = vld [vmem:[%s1865_s5] sm:$0xff]  ;;  %v259_v24 = vld [vmem:[%s1865_s5 + $0x8] sm:$0xff]  ;;  %v261_v25 = vld [vmem:[%s1865_s5 + $0x18] sm:$0xff]  ;;  %p1405_p12 = pnand %p1404_p11, %p1547_p5  ;;  %s1409_s15 = scalar_lea.vmem %s1408_s14, 2048 }
  0x1b   : > { %1286 = vmatprep.subr.mxu1 %v1173_v7  ;;  %1267 = vmatpush3.msra.mxu0 %v266_v6  ;;  %v262_v26 = vld [vmem:[%s1865_s5 + $0x20] sm:$0xff]  ;;  %v263_v27 = vld [vmem:[%s1865_s5 + $0x28] sm:$0xff]  ;;  %v264_v28 = vld [vmem:[%s1865_s5 + $0x30] sm:$0xff]  ;;  %p1410_p0 = scmp.lt.s32.totalorder %s1816_s29, %s1408_s14  ;;  %p1411_p1 = scmp.lt.s32.totalorder %s1409_s15, %s1403_s25 }
  0x1c   : > { %1268 = vmatprep.mubr.msk.f32.mxu0 %vm270_vm0, %v250_v8  ;;  %1287 = vmatpush3.msra.mxu1 %v1173_v7  ;;  %v265_v29 = vld [vmem:[%s1865_s5 + $0x38] sm:$0xff]  ;;  %v1670_v7 = vshrl.u32 %v732_v62, 7  ;;  %p1406_p13 = pneg %p1405_p12 }
  0x1d   : > { %1288 = vmatprep.mubr.msk.f32.mxu1 %vm270_vm0, %v250_v8  ;;  %1269 = vmatmul.mubr.msk.f32.vlgmr.msra.gmra.mxu0 %vm270_vm0, %v251_v9  ;;  %p1412_p2 = por %p1411_p1, %p1410_p0 }
  0x1e   : > { %1289 = vmatmul.mubr.msk.f32.vlgmr.msra.gmra.mxu1 %vm270_vm0, %v251_v9  ;;  %1300 = vmatprep.subr.mxu0 %v1188_v10  ;;  %vm734_vm1 = vcmp.lt.s32.totalorder %v1670_v7, 1  ;;  %vm823_vm2 = vcmp.lt.s32.totalorder %v1670_v7, 7 }
  0x1f   : > { %1271 = vmatprep.mubr.msk.f32.mxu0 %vm270_vm0, %v252_v11  ;;  %1301 = vmatpush3.msra.mxu0 %v1188_v10  ;;  %p1413_p3 = pnand %p1412_p2, %p1406_p13 }
  0x20   : > { %1291 = vmatprep.mubr.msk.f32.mxu1 %vm270_vm0, %v252_v11  ;;  %1302 = vmatprep.subr.mxu0 %v1187_v12 }
  0x21   : > { %1272 = vmatmul.mubr.msk.f32.gmra.mxu0 %vm270_vm0, %v253_v13  ;;  %632 = vperm.xlu1 %1383, %v1613_v17  }
  0x22   : > { %1292 = vmatmul.mubr.msk.f32.gmra.mxu1 %vm270_vm0, %v253_v13  ;;  %1303 = vmatpush3.msra.mxu0 %v1187_v12 }
  0x23   : > { %1274 = vmatprep.mubr.msk.f32.mxu0 %vm270_vm0, %v254_v14  ;;  %1294 = vmatprep.mubr.msk.f32.mxu1 %vm270_vm0, %v254_v14 }
  0x24   : > { %1304 = vmatprep.subr.mxu0 %v1186_v15  ;;  %1385 = vset.pattern.permute.xlu0 %v1466_v23 }
  0x25   : > { %1305 = vmatpush3.msra.mxu0 %v1186_v15  ;;  %1384 = vset.pattern.permute.xlu1 %v1466_v23 }
  0x26   : > { %1275 = vmatmul.mubr.msk.f32.gmra.mxu0 %vm270_vm0, %v255_v18  ;;  %1295 = vmatmul.mubr.msk.f32.gmra.mxu1 %vm270_vm0, %v255_v18 }
  0x27   : > { %1277 = vmatprep.mubr.msk.f32.mxu0 %vm270_vm0, %v256_v19  ;;  %1297 = vmatprep.mubr.msk.f32.mxu1 %vm270_vm0, %v256_v19 }
  0x28   : > { %1306 = vmatprep.subr.mxu0 %v1185_v20  ;;  %677 = vperm.xlu1 %1384, %v258_v22  }
  0x29   : > { %1307 = vmatpush3.msra.mxu0 %v1185_v20  ;;  %681 = vperm.xlu0 %1385, %v259_v24  }
  0x2a   : > { %1278 = vmatmul.mubr.msk.f32.gmra.mxu0 %vm270_vm0, %v257_v21  ;;  %1298 = vmatmul.mubr.msk.f32.gmra.mxu1 %vm270_vm0, %v257_v21 }
  0x2b   : > { %1308 = vmatprep.mubr.msk.f32.mxu0 %vm270_vm0, %v250_v8 }
  0x2c   : > { %685 = vperm.xlu1 %1384, %v1613_v17  }
  0x2d   : > { %1386 = vset.pattern.permute.xlu0 %v1465_v16 }
  0x2e   : > { %1309 = vmatmul.mubr.msk.f32.vlgmr.msra.gmra.mxu0 %vm270_vm0, %v251_v9  ;;  %622 = vperm.xlu0 %1386, %v258_v22  }
  0x2f   : > { %1311 = vmatprep.mubr.msk.f32.mxu0 %vm270_vm0, %v252_v11 }
  0x30   : > { %1387 = vset.pattern.permute.xlu1 %v1465_v16 }
  0x31   : > { %637 = vperm.xlu1 %1387, %v261_v25  }
  0x32   : > { %1312 = vmatmul.mubr.msk.f32.gmra.mxu0 %vm270_vm0, %v253_v13  ;;  %627 = vperm.xlu0 %1386, %v259_v24  }
  0x33   : > { %1314 = vmatprep.mubr.msk.f32.mxu0 %vm270_vm0, %v254_v14 }
  0x35   : > { %1388 = vset.pattern.permute.xlu1 %v1466_v23 }
  0x36   : > { %1315 = vmatmul.mubr.msk.f32.gmra.mxu0 %vm270_vm0, %v255_v18  ;;  %689 = vperm.xlu1 %1388, %v261_v25  }
  0x37   : > { %1317 = vmatprep.mubr.msk.f32.mxu0 %vm270_vm0, %v256_v19  ;;  %642 = vperm.xlu0 %1386, %v262_v26  }
  0x3a   : > { %1318 = vmatmul.mubr.msk.f32.gmra.mxu0 %vm270_vm0, %v257_v21  ;;  %693 = vperm.xlu1 %1388, %v262_v26  }
  0x3b   : > { %647 = vperm.xlu0 %1386, %v263_v27  }
  0x3e   : > { %1389 = vset.pattern.permute.xlu1 %v1465_v16 }
  0x3f   : > { %1390 = vset.pattern.permute.xlu0 %v1466_v23  ;;  %652 = vperm.xlu1 %1389, %v264_v28  }
  0x40   : > { %697 = vperm.xlu0 %1390, %v263_v27  }
  0x43   : > { %1391 = vset.pattern.permute.xlu1 %v1466_v23 }
  0x44   : > { %705 = vperm.xlu0 %1390, %v265_v29   ;;  %701 = vperm.xlu1 %1391, %v264_v28  }
  0x48   : > { %1394 = vset.pattern.permute.xlu0 %v1467_v30  ;;  %1392 = vset.pattern.permute.xlu1 %v1465_v16 }
  0x49   : > { %748 = vperm.xlu0 %1394, %v259_v24   ;;  %657 = vperm.xlu1 %1392, %v265_v29  }
  0x4d   : > { %752 = vperm.xlu0 %1394, %v1613_v17   ;;  %1393 = vset.pattern.permute.xlu1 %v1467_v30 }
  0x4e   : > { %744 = vperm.xlu1 %1393, %v258_v22  }
  0x51   : > { %764 = vperm.xlu0 %1394, %v263_v27  }
  0x52   : > { %1395 = vset.pattern.permute.xlu1 %v1468_v31 }
  0x53   : > { %833 = vperm.xlu1 %1395, %v258_v22  }
  0x55   : > { %772 = vperm.xlu0 %1394, %v265_v29  }
  0x57   : > { %837 = vperm.xlu1 %1395, %v259_v24  }
  0x59   : > { %1401 = vset.pattern.permute.xlu0 %v1468_v31 }
  0x5a   : > { %845 = vperm.xlu0 %1401, %v261_v25  }
  0x5b   : > { %1396 = vset.pattern.permute.xlu1 %v1467_v30 }
  0x5c   : > { %756 = vperm.xlu1 %1396, %v261_v25  }
  0x5e   : > { %853 = vperm.xlu0 %1401, %v263_v27  }
  0x60   : > { %1397 = vset.pattern.permute.xlu1 %v1468_v31 }
  0x61   : > { %841 = vperm.xlu1 %1397, %v1613_v17  }
  0x62   : > { %861 = vperm.xlu0 %1401, %v265_v29  }
  0x65   : > { %1398 = vset.pattern.permute.xlu1 %v1467_v30 }
  0x66   : > { %760 = vperm.xlu1 %1398, %v262_v26  }
  0x6a   : > { %1399 = vset.pattern.permute.xlu1 %v1468_v31 }
  0x6b   : > { %849 = vperm.xlu1 %1399, %v262_v26   ;;  %v936_v26 = vld [vmem:[%s1863_s3 + $0x8] sm:$0xff] }
  0x6c   : > { %1320 = vmatprep.subr.mxu1 %v936_v26 }
  0x6d   : > { %1321 = vmatpush3.msra.mxu1 %v936_v26 }
  0x6f   : > { %1400 = vset.pattern.permute.xlu1 %v1467_v30 }
  0x70   : > { %768 = vperm.xlu1 %1400, %v264_v28  }
  0x74   : > { %1402 = vset.pattern.permute.xlu1 %v1468_v31 }
  0x75   : > { %857 = vperm.xlu1 %1402, %v264_v28  }
  0x9c   : > { %v633_v32 = vpop.permute.xlu1 %632 }
  0xa3   : > { %v678_v33 = vpop.permute.xlu1 %677 }
  0xa4   : > { %v682_v35 = vpop.permute.xlu0 %681 }
  0xa7   : > { %v686_v34 = vpop.permute.xlu1 %685 }
  0xa9   : > { %v623_v37 = vpop.permute.xlu0 %622 }
  0xac   : > { %v638_v36 = vpop.permute.xlu1 %637 }
  0xad   : > { %v628_v39 = vpop.permute.xlu0 %627 }
  0xb1   : > { %v1662_v38 = vpop.permute.xlu1 %689 }
  0xb2   : > { %v643_v41 = vpop.permute.xlu0 %642 }
  0xb5   : > { %v694_v40 = vpop.permute.xlu1 %693 }
  0xb6   : > { %v648_v47 = vpop.permute.xlu0 %647 }
  0xba   : > { %v653_v44 = vpop.permute.xlu1 %652 }
  0xbb   : > { %v1666_v54 = vpop.permute.xlu0 %697 }
  0xbf   : > { %v1664_v52 = vpop.permute.xlu1 %701  ;;  %v706_v1 = vpop.permute.xlu0 %705 }
  0xc4   : > { %v658_v58 = vpop.permute.xlu1 %657 }
  0xdd   : > { %v1270_v42 = vpop.f32.mrf.mxu0 }
  0xde   : > { %v1290_v43 = vpop.f32.mrf.mxu1  ;;  %v662_v8 = vmul.f32 %v1270_v42, %v633_v32 }
  0xdf   : > { %v361_v45 = vpop.f32.mrf.mxu0 }
  0xe0   : > { %v471_v46 = vpop.f32.mrf.mxu1  ;;  %v661_v4 = vmul.f32 %v628_v39, %v361_v45 }
  0xe1   : > { %v1273_v48 = vpop.f32.mrf.mxu0 }
  0xe2   : > { %v1293_v49 = vpop.f32.mrf.mxu1  ;;  %v669_v16 = vadd.f32 %v1290_v43, %v661_v4  ;;  %v664_v17 = vmul.f32 %v1273_v48, %v643_v41 }
  0xe3   : > { %v371_v50 = vpop.f32.mrf.mxu0 }
  0xe4   : > { %v481_v51 = vpop.f32.mrf.mxu1  ;;  %v663_v18 = vmul.f32 %v638_v36, %v371_v50 }
  0xe5   : > { %v670_v13 = vadd.f32 %v662_v8, %v481_v51 }
  0xe6   : > { %v1276_v53 = vpop.f32.mrf.mxu0  ;;  %v1668_v55 = vpop.f32.mrf.mxu1  ;;  %v671_v31 = vadd.f32 %v1293_v49, %v663_v18 }
  0xe7   : > { %v666_v32 = vmul.f32 %v1276_v53, %v653_v44 }
  0xe8   : > { %v381_v56 = vpop.f32.mrf.mxu0  ;;  %v491_v60 = vpop.f32.mrf.mxu1 }
  0xe9   : > { %v672_v24 = vadd.f32 %v664_v17, %v491_v60  ;;  %v745_v60 = vpop.permute.xlu1 %744 }
  0xea   : > { %v1279_v57 = vpop.f32.mrf.mxu0  ;;  %v1299_v5 = vpop.f32.mrf.mxu1 }
  0xeb   : > { %v660_v59 = vmul.f32 %v1279_v57, %v623_v37 }
  0xec   : > { %v391_v61 = vpop.f32.mrf.mxu0  ;;  %v501_v27 = vpop.f32.mrf.mxu1 }
  0xed   : > { %v667_v63 = vmul.f32 %v658_v58, %v391_v61  ;;  %v668_v2 = vadd.f32 %v660_v59, %v471_v46  ;;  %v674_v41 = vadd.f32 %v666_v32, %v501_v27  ;;  %v834_v61 = vpop.permute.xlu1 %833 }
  0xee   : > { %v1310_v0 = vpop.f32.mrf.mxu0 }
  0xef   : > { %v708_v3 = vmul.f32 %v1310_v0, %v678_v33  ;;  %v675_v9 = vadd.f32 %v1299_v5, %v667_v63  ;;  %v665_v33 = vmul.f32 %v648_v47, %v381_v56  ;;  %v749_v63 = vpop.permute.xlu0 %748 }
  0xf0   : > { %v581_v6 = vpop.f32.mrf.mxu0 }
  0xf1   : > { %v716_v10 = vadd.f32 %v708_v3, %v668_v2  ;;  %v715_v11 = vmul.f32 %v706_v1, %v581_v6  ;;  %v673_v47 = vadd.f32 %v1668_v55, %v665_v33  ;;  %v838_v62 = vpop.permute.xlu1 %837 }
  0xf2   : > { %v1313_v12 = vpop.f32.mrf.mxu0 }
  0xf3   : > { %v1672_v14 = vadd.f32 %v715_v11, %v675_v9  ;;  %v710_v15 = vmul.f32 %v1313_v12, %v686_v34  ;;  %791 = vrot.lane.b32.xlu1 %v716_v10, %s1469_s9  ;;  %v724_v22 = vrot.slane %v716_v10, 7  ;;  %v753_v1 = vpop.permute.xlu0 %752 }
  0xf4   : > { %v591_v19 = vpop.f32.mrf.mxu0 }
  0xf5   : > { %v718_v20 = vadd.f32 %v710_v15, %v670_v13  ;;  %v709_v21 = vmul.f32 %v682_v35, %v591_v19  ;;  %v731_v23 = vrot.slane %v1672_v14, 7  ;;  %v935_v35 = vld [vmem:[%s1863_s3] sm:$0xff]  ;;  %v757_v0 = vpop.permute.xlu1 %756 }
  0xf6   : > { %v1316_v25 = vpop.f32.mrf.mxu0  ;;  %1322 = vmatprep.subr.mxu1 %v935_v35 }
  0xf7   : > { %v717_v28 = vadd.f32 %v709_v21, %v669_v16  ;;  %v712_v29 = vmul.f32 %v1316_v25, %v694_v40  ;;  %872 = vrot.lane.b32.xlu1 %v716_v10, %s1470_s12  ;;  %795 = vrot.lane.b32.xlu0 %v718_v20, %s1469_s9  ;;  %v1684_v30 = vsel %vm734_vm1, %v731_v23, %v724_v22  ;;  %v726_v40 = vrot.slane %v718_v20, 7  ;;  %v1734_v3 = vpop.permute.xlu0 %764 }
  0xf8   : > { %v601_v34 = vpop.f32.mrf.mxu0  ;;  %1323 = vmatpush3.msra.mxu1 %v935_v35 }
  0xf9   : > { %v725_v36 = vrot.slane %v717_v28, 7  ;;  %v720_v37 = vadd.f32 %v712_v29, %v672_v24  ;;  %v711_v39 = vmul.f32 %v1662_v38, %v601_v34  ;;  %v842_v2 = vpop.permute.xlu1 %841 }
  0xfa   : > { %v1319_v42 = vpop.f32.mrf.mxu0 }
  0xfb   : > { %v741_v43 = vsel %vm734_vm1, %v724_v22, %v725_v36  ;;  %v719_v44 = vadd.f32 %v711_v39, %v671_v31  ;;  %v1694_v45 = vsel %vm734_vm1, %v725_v36, %v726_v40  ;;  %v714_v46 = vmul.f32 %v1319_v42, %v1664_v52  ;;  %876 = vrot.lane.b32.xlu1 %v718_v20, %s1470_s12  ;;  %v1736_v5 = vpop.permute.xlu0 %772 }
  0xfc   : > { %793 = vrot.lane.b32.xlu0 %v717_v28, %s1469_s9  ;;  %v611_v38 = vpop.f32.mrf.mxu0  ;;  %v728_v50 = vrot.slane %v720_v37, 7  ;;  %v776_v21 = vmul.f32 %v749_v63, %v741_v43  ;;  %v775_v22 = vmul.f32 %v745_v60, %v1684_v30  ;;  %v777_v32 = vmul.f32 %v753_v1, %v1694_v45  ;;  %v1761_v30 = vld [vmem:[%s1862_s2] ss:$0 sm:$0xff] }
  0xfd   : > { %v722_v48 = vadd.f32 %v714_v46, %v674_v41  ;;  %v727_v49 = vrot.slane %v719_v44, 7  ;;  %v713_v51 = vmul.f32 %v1666_v54, %v611_v38  ;;  %v761_v4 = vpop.permute.xlu1 %760 }
  0xff   : > { %v1703_v53 = vsel %vm734_vm1, %v727_v49, %v728_v50  ;;  %v721_v56 = vadd.f32 %v713_v51, %v673_v47  ;;  %874 = vrot.lane.b32.xlu1 %v717_v28, %s1470_s12  ;;  %v730_v52 = vrot.slane %v722_v48, 7  ;;  %v1708_v55 = vsel %vm734_vm1, %v726_v40, %v727_v49  ;;  %v846_v8 = vpop.permute.xlu0 %845 }
 0x100   : > { %797 = vrot.lane.b32.xlu0 %v719_v44, %s1469_s9  ;;  %v779_v46 = vmul.f32 %v761_v4, %v1703_v53  ;;  %v778_v53 = vmul.f32 %v757_v0, %v1708_v55 }
 0x101   : > { %v729_v57 = vrot.slane %v721_v56, 7  ;;  %v1713_v58 = vsel %vm734_vm1, %v730_v52, %v731_v23  ;;  %v850_v6 = vpop.permute.xlu1 %849 }
 0x103   : > { %v1717_v54 = vsel %vm734_vm1, %v728_v50, %v729_v57  ;;  %v1721_v59 = vsel %vm734_vm1, %v729_v57, %v730_v52  ;;  %799 = vrot.lane.b32.xlu1 %v720_v37, %s1469_s9  ;;  %v1740_v10 = vpop.permute.xlu0 %853 }
 0x104   : > { %801 = vrot.lane.b32.xlu0 %v721_v56, %s1469_s9 }
 0x105   : > { %v1738_v9 = vpop.permute.xlu1 %768 }
 0x107   : > { %880 = vrot.lane.b32.xlu1 %v720_v37, %s1470_s12  ;;  %v1744_v12 = vpop.permute.xlu0 %861 }
 0x108   : > { %882 = vrot.lane.b32.xlu0 %v721_v56, %s1470_s12 }
 0x109   : > { %v1742_v11 = vpop.permute.xlu1 %857 }
 0x10b   : > { %878 = vrot.lane.b32.xlu1 %v719_v44, %s1470_s12 }
 0x10c   : > { %886 = vrot.lane.b32.xlu0 %v1672_v14, %s1470_s12 }
 0x10f   : > { %803 = vrot.lane.b32.xlu1 %v722_v48, %s1469_s9 }
 0x113   : > { %805 = vrot.lane.b32.xlu1 %v1672_v14, %s1469_s9 }
 0x117   : > { %884 = vrot.lane.b32.xlu1 %v722_v48, %s1470_s12  ;;  %s1820_s12 = scalar_lea.sflag [#allocation3], %s242_s17 }
 0x165   : > { %v1746_v13 = vpop.permute.xlu1 %791 }
 0x166   : > { %v815_v18 = vrot.slane %v1746_v13, 1 }
 0x169   : > { %v873_v14 = vpop.permute.xlu1 %872  ;;  %v796_v15 = vpop.permute.xlu0 %795 }
 0x16a   : > { %v817_v19 = vrot.slane %v796_v15, 1  ;;  %v896_v26 = vadd.f32 %v873_v14, %v775_v22 }
 0x16d   : > { %v877_v16 = vpop.permute.xlu1 %876 }
 0x16e   : > { %v794_v17 = vpop.permute.xlu0 %793  ;;  %v898_v36 = vadd.f32 %v877_v16, %v777_v32 }
 0x16f   : > { %v816_v20 = vrot.slane %v794_v17, 1  ;;  %v780_v17 = vmul.f32 %v1734_v3, %v1717_v54  ;;  %v781_v54 = vmul.f32 %v1738_v9, %v1721_v59 }
 0x171   : > { %v829_v23 = vsel %vm823_vm2, %v816_v20, %v817_v19  ;;  %v830_v24 = vsel %vm823_vm2, %v815_v18, %v816_v20  ;;  %v875_v25 = vpop.permute.xlu1 %874 }
 0x172   : > { %v864_v27 = vmul.f32 %v834_v61, %v830_v24  ;;  %v865_v28 = vmul.f32 %v838_v62, %v829_v23  ;;  %v897_v29 = vadd.f32 %v875_v25, %v776_v21  ;;  %v798_v31 = vpop.permute.xlu0 %797  ;;  %v782_v24 = vmul.f32 %v1736_v5, %v1713_v58 }
 0x173   : > { %v818_v33 = vrot.slane %v798_v31, 1 }
 0x174   : > { %v904_v34 = vadd.f32 %v896_v26, %v864_v27  ;;  %v905_v35 = vadd.f32 %v897_v29, %v865_v28 }
 0x175   : > { %v828_v37 = vsel %vm823_vm2, %v817_v19, %v818_v33  ;;  %v800_v39 = vpop.permute.xlu1 %799 }
 0x176   : > { %v920_v40 = vadd.f32 %v1761_v30, %v905_v35  ;;  %v866_v41 = vmul.f32 %v842_v2, %v828_v37  ;;  %v819_v42 = vrot.slane %v800_v39, 1  ;;  %v802_v43 = vpop.permute.xlu0 %801  ;;  %v919_v44 = vadd.f32 %v1761_v30, %v904_v34 }
 0x177   : > { %v820_v45 = vrot.slane %v802_v43, 1 }
 0x178   : > { %v928_v47 = vmax.f32 %v920_v40, 0.0  ;;  %v906_v38 = vadd.f32 %v898_v36, %v866_v41  ;;  %v927_v48 = vmax.f32 %v919_v44, 0.0  ;;  %v827_v57 = vsel %vm823_vm2, %v818_v33, %v819_v42 }
 0x179   : > { %v826_v49 = vsel %vm823_vm2, %v819_v42, %v820_v45  ;;  %v881_v50 = vpop.permute.xlu1 %880  ;;  %v867_v63 = vmul.f32 %v846_v8, %v827_v57 }
 0x17a   : > { %1324 = vmatprep.mubr.msk.f32.mxu1 %vm944_vm3, %v927_v48  ;;  %v868_v51 = vmul.f32 %v850_v6, %v826_v49  ;;  %v900_v56 = vadd.f32 %v881_v50, %v779_v46  ;;  %v921_v52 = vadd.f32 %v1761_v30, %v906_v38  ;;  %v883_v2 = vpop.permute.xlu0 %882 }
 0x17b   : > { %1325 = vmatmul.mubr.msk.f32.vlgmr.msra.gmra.mxu1 %vm944_vm3, %v928_v47  ;;  %v901_v8 = vadd.f32 %v883_v2, %v780_v17 }
 0x17c   : > { %v929_v60 = vmax.f32 %v921_v52, 0.0  ;;  %v908_v61 = vadd.f32 %v900_v56, %v868_v51 }
 0x17d   : > { %v879_v62 = vpop.permute.xlu1 %878 }
 0x17e   : > { %v899_v1 = vadd.f32 %v879_v62, %v778_v53  ;;  %1327 = vmatprep.mubr.msk.f32.mxu1 %vm944_vm3, %v929_v60  ;;  %v923_v6 = vadd.f32 %v1761_v30, %v908_v61  ;;  %v887_v22 = vpop.permute.xlu0 %886 }
 0x17f   : > { %v903_v26 = vadd.f32 %v887_v22, %v782_v24 }
 0x180   : > { %v907_v4 = vadd.f32 %v899_v1, %v867_v63  ;;  %v931_v0 = vmax.f32 %v923_v6, 0.0 }
 0x181   : > { %v804_v14 = vpop.permute.xlu1 %803 }
 0x182   : > { %v922_v15 = vadd.f32 %v1761_v30, %v907_v4  ;;  %v821_v16 = vrot.slane %v804_v14, 1 }
 0x184   : > { %v930_v19 = vmax.f32 %v922_v15, 0.0  ;;  %v825_v55 = vsel %vm823_vm2, %v820_v45, %v821_v16 }
 0x185   : > { %v869_v20 = vmul.f32 %v1740_v10, %v825_v55  ;;  %v806_v21 = vpop.permute.xlu1 %805 }
 0x186   : > { %v822_v23 = vrot.slane %v806_v21, 1  ;;  %1328 = vmatmul.mubr.msk.f32.gmra.mxu1 %vm944_vm3, %v930_v19 }
 0x187   : > { %v909_v25 = vadd.f32 %v901_v8, %v869_v20  ;;  %1330 = vmatprep.mubr.msk.f32.mxu1 %vm944_vm3, %v931_v0 }
 0x188   : > { %v824_v3 = vsel %vm823_vm2, %v821_v16, %v822_v23  ;;  %v831_v10 = vsel %vm823_vm2, %v822_v23, %v815_v18 }
 0x189   : > { %v871_v27 = vmul.f32 %v1744_v12, %v831_v10  ;;  %v870_v58 = vmul.f32 %v1742_v11, %v824_v3  ;;  %v885_v5 = vpop.permute.xlu1 %884  ;;  %v924_v28 = vadd.f32 %v1761_v30, %v909_v25  ;;  %v1198_v11 = vld [vmem:[%s1864_s4] ss:$0 sm:$0xff] }
 0x18a   : > { %v902_v29 = vadd.f32 %v885_v5, %v781_v54 }
 0x18b   : > { %v911_v59 = vadd.f32 %v903_v26, %v871_v27  ;;  %v932_v9 = vmax.f32 %v924_v28, 0.0 }
 0x18c   : > { %v910_v31 = vadd.f32 %v902_v29, %v870_v58 }
 0x18d   : > { %1331 = vmatmul.mubr.msk.f32.gmra.mxu1 %vm944_vm3, %v932_v9  ;;  %v926_v13 = vadd.f32 %v1761_v30, %v911_v59 }
 0x18e   : > { %v925_v7 = vadd.f32 %v1761_v30, %v910_v31 }
 0x18f   : > { %v934_v32 = vmax.f32 %v926_v13, 0.0 }
 0x190   : > { %v933_v18 = vmax.f32 %v925_v7, 0.0 }
 0x192   : > { %1333 = vmatprep.mubr.msk.f32.mxu1 %vm944_vm3, %v933_v18 }
 0x193   : > { %1334 = vmatmul.mubr.msk.f32.gmra.mxu1 %vm944_vm3, %v934_v32 }
 0x23b   : > { %v1326_v12 = vpop.f32.mrf.mxu1 }
 0x23c   : > { %v1041_v33 = vadd.f32 %v1326_v12, %v1198_v11 }
 0x23d   : > { %v1035_v34 = vpop.f32.mrf.mxu1 }
 0x23e   : > { %1075 = vst [vmem:[%s244_s26 + $0x8] sm:$0xff] %v1041_v33  ;;  %v1036_v30 = vadd.f32 %v1198_v11, %v1035_v34 }
 0x240   : > { %1074 = vst [vmem:[%s244_s26] sm:$0xff] %v1036_v30 }
 0x246   : > { %v1329_v35 = vpop.f32.mrf.mxu1 }
 0x247   : > { %v1051_v36 = vadd.f32 %v1329_v35, %v1198_v11 }
 0x248   : > { %v1045_v37 = vpop.f32.mrf.mxu1 }
 0x249   : > { %1077 = vst [vmem:[%s244_s26 + $0x18] sm:$0xff] %v1051_v36  ;;  %v1046_v39 = vadd.f32 %v1198_v11, %v1045_v37 }
 0x24b   : > { %1076 = vst [vmem:[%s244_s26 + $0x10] sm:$0xff] %v1046_v39 }
 0x24d   : > { %v1332_v40 = vpop.f32.mrf.mxu1 }
 0x24e   : > { %v1061_v41 = vadd.f32 %v1332_v40, %v1198_v11 }
 0x24f   : > { %v1055_v42 = vpop.f32.mrf.mxu1 }
 0x250   : > { %1079 = vst [vmem:[%s244_s26 + $0x28] sm:$0xff] %v1061_v41  ;;  %v1056_v43 = vadd.f32 %v1198_v11, %v1055_v42 }
 0x252   : > { %1078 = vst [vmem:[%s244_s26 + $0x20] sm:$0xff] %v1056_v43 }
 0x253   : > { %v1335_v44 = vpop.f32.mrf.mxu1 }
 0x254   : > { %v1071_v45 = vadd.f32 %v1335_v44, %v1198_v11 }
 0x255   : > { %v1065_v46 = vpop.f32.mrf.mxu1 }
 0x256   : > { %1081 = vst [vmem:[%s244_s26 + $0x38] sm:$0xff] %v1071_v45  ;;  %v1066_v47 = vadd.f32 %v1198_v11, %v1065_v46 }
 0x258   : > { %1080 = vst [vmem:[%s244_s26 + $0x30] sm:$0xff] %v1066_v47 }
 0x259   : > { %1416 = shalt.err (!%p1413_p3)
}
 0x25a   : > { %s1417_s16 = scalar_lea.hbm %s1814_s11, 1024  ;;  %s1421_s19 = scalar_lea.hbm %s1866_s6, 2048 }
 0x25b   : > { %p1418_p4 = scmp.ne.s32.totalorder %s1814_s11, %s1417_s16  ;;  %p1422_p9 = scmp.lt.s32.totalorder %s1814_s11, %s1866_s6 }
 0x25c   : > { %p1423_p10 = scmp.lt.s32.totalorder %s1421_s19, %s1417_s16 }
 0x25d   : > { %p1419_p7 = pnand %p1418_p4, %p1547_p5 }
 0x25e   : > { %p1424_p11 = por %p1423_p10, %p1422_p9 }
 0x25f   : > { %p1420_p8 = pneg %p1419_p7 }
 0x261   : > { %p1425_p12 = pnand %p1424_p11, %p1420_p8 }
 0x263   : > { %1428 = shalt.err (!%p1425_p12)
}
 0x264   : > { %s1472_s28 = smov 128   ;;  %s1473_s9 = smov 8  }
 0x265   : > { %1336 = dma.vmem_to_hbm [thread:$0]  (%p1547_p5), %s1816_s29, 1024, %s1814_s11, %s1820_s12, %s1472_s28, %s1472_s28, %s1473_s9  }
 0x266 PF: > { %p1342_p13 = scmp.ge.s32.totalorder %s1463_s24, 2  ;;  %s1111_s10 = sand.u32 1, %s1451_s21  }
 0x267   : > { %s1112_s25 = scalar_lea.sflag [#allocation3], %s1111_s10 }
 0x268   : > { %p1339_p0 = pnand %p1342_p13, %p1551_p6 }
 0x26a   : > { %p1340_p1 = pneg %p1339_p0 }
 0x26c   : > { %1446 = dma.done.wait (%p1340_p1), %s1112_s25, 1024  }
 0x26d   : > { %1448 = vsyncadd (%p1340_p1), %s1112_s25, 4294966272  ;;  %p16_p2 = scmp.ge.s32.totalorder %s1534_s27, 4   ;;  %s1869_s21 = smov %s1455_s22 }
 0x26e   : > { %s1870_s22 = smov %s1459_s23  ;;  %s1871_s23 = smov %s1545_s30 }
 0x26f   : > { %s1872_s24 = smov %s1534_s27  ;;  %18 = sbr.rel (!%p16_p2) target bundleno = 3 (0x3), region = 81 }
 0x274   :  { %1117 = vsyncpa [#allocation3], 1 }
 0x275   :  { %1119 = vsyncpa [#allocation3 + $0x1], 1 }

</bundles_post_ra>
